<compile_context>
chip_gen: v7x
topology: tpu7x:2x2x1
jax: 0.10.0
libtpu: 0.0.40
codegen_flags: <defaults>
</compile_context>

<pallas_src>
import functools

import jax
import jax.numpy as jnp
from jax.experimental import pallas as pl
from jax.experimental.pallas import tpu as pltpu


def _round_up(x, m):
    return (x + m - 1) // m * m


def _conv2d_mxu_kernel(flat_ref, w_ref, o_ref, cols_ref, *,
                       n, kh, kw, stride, c_pad, wq, ncols_pad):
    """In-kernel im2col assembly + one MXU matmul.

    flat_ref : (N, s*s, c_pad, Ltot) phase-decomposed, spatially flattened,
               channel-padded, right-padded input (mxu dtype)
    w_ref    : (C_out, K_pad) weights, K_pad = kh*kw*c_pad, tap-major order
               (kh, kw, c_pad); padded channel columns are exact zeros
    o_ref    : (C_out, N*ncols_pad) lane-dense f32 output
    cols_ref : (K_pad, N*ncols_pad) im2col scratch (mxu dtype); every element
               is overwritten below, so no zero-init is needed.
    """
    s = stride
    # Assemble the im2col matrix.  Every tap is a *contiguous* static slice of
    # the flattened-spatial lane axis (stride was absorbed by the wrapper's
    # phase decomposition).  Stores are full-tile: tap*c_pad is a multiple of
    # the sublane pack, img*ncols_pad is a multiple of 128 lanes, and the
    # block is (c_pad, ncols_pad) = (pack-multiple, 128-multiple).
    for img in range(n):
        col0 = img * ncols_pad
        for dh in range(kh):
            for dw in range(kw):
                tap = dh * kw + dw
                phase = (dh % s) * s + (dw % s)
                off = (dh // s) * wq + (dw // s)
                # TODO(synk): if this lane-misaligned source slice lowers to
                # VALU masked selects instead of an XLU rotate, switch to an
                # explicit pltpu.roll of the flat row before a lane-0 store.
                cols_ref[tap * c_pad:(tap + 1) * c_pad,
                         col0:col0 + ncols_pad] = (
                    flat_ref[img, phase, :, off:off + ncols_pad])

    # One MXU matmul: (C_out, K_pad) @ (K_pad, N*ncols_pad), f32 accumulation.
    o_ref[...] = jnp.dot(
        w_ref[...], cols_ref[...],
        preferred_element_type=jnp.float32).astype(o_ref.dtype)


def conv2d(x, kernel, padding=0, stride=1, mxu_dtype=jnp.bfloat16):
    """Matches Exercise_7 Conv2d.forward; accepts (C,H,W) or (N,C,H,W)."""
    squeeze = (x.ndim == 3)
    if squeeze:
        x = x[None]
    n, c_in, h, w = x.shape
    c_out, c_in_k, kh, kw = kernel.shape
    assert c_in == c_in_k, "input channels must match kernel in-channels"
    s = int(stride)
    assert s >= 1

    # Sublane packing granularity for the MXU operand dtype: 8 for f32,
    # 16 for bf16 (32 for fp8).
    pack = 8 * (4 // jnp.dtype(mxu_dtype).itemsize)
    c_pad = _round_up(c_in, pack)

    # --- ZeroPad2d + channel/spatial zero-padding (layout glue) ------------
    xf = x.astype(jnp.float32)
    if padding > 0:
        xf = jnp.pad(xf, ((0, 0), (0, 0),
                          (padding, padding), (padding, padding)))
    hp, wp = h + 2 * padding, w + 2 * padding
    oh = (hp - kh) // s + 1
    ow = (wp - kw) // s + 1

    # --- phase decomposition (identity when stride == 1) -------------------
    # phases[n, p*s+q, c, J, I] == x_padded[n, c, J*s + p, I*s + q]: a conv
    # tap (dh, dw) at stride s becomes a *contiguous* window of phase
    # (dh % s, dw % s) at flattened offset (dh // s)*wq + (dw // s).
    hq, wq = -(-hp // s), -(-wp // s)          # ceil-div
    xf = jnp.pad(xf, ((0, 0), (0, c_pad - c_in),
                      (0, hq * s - hp), (0, wq * s - wp)))
    phases = xf.reshape(n, c_pad, hq, s, wq, s).transpose(0, 3, 5, 1, 2, 4)

    # --- flatten spatial into the lane axis; right-pad so every tap slice
    #     has the same static, 128-multiple length ncols_pad ----------------
    ncols = oh * wq                      # useful columns per image
    ncols_pad = _round_up(ncols, 128)    # lane-aligned per-image block
    max_off = ((kh - 1) // s) * wq + ((kw - 1) // s)
    ltot = _round_up(max(hq * wq, max_off + ncols_pad), 128)
    flat = phases.reshape(n, s * s, c_pad, hq * wq)
    if ltot > hq * wq:
        flat = jnp.pad(flat, ((0, 0), (0, 0), (0, 0), (0, ltot - hq * wq)))
    flat = flat.astype(mxu_dtype)        # cast in wrapper: kernel gets bf16

    # --- flat 2-D weights, channel-padded with exact zeros -----------------
    k_pad = kh * kw * c_pad
    w4 = jnp.transpose(kernel.astype(jnp.float32), (0, 2, 3, 1))
    w4 = jnp.pad(w4, ((0, 0), (0, 0), (0, 0), (0, c_pad - c_in)))
    w2d = w4.reshape(c_out, k_pad).astype(mxu_dtype)

    kern = functools.partial(
        _conv2d_mxu_kernel, n=n, kh=kh, kw=kw, stride=s, c_pad=c_pad,
        wq=wq, ncols_pad=ncols_pad)
    out2d = pl.pallas_call(
        kern,
        out_shape=jax.ShapeDtypeStruct((c_out, n * ncols_pad), jnp.float32),
        in_specs=[
            pl.BlockSpec(memory_space=pltpu.MemorySpace.VMEM),
            pl.BlockSpec(memory_space=pltpu.MemorySpace.VMEM),
        ],
        out_specs=pl.BlockSpec(memory_space=pltpu.MemorySpace.VMEM),
        scratch_shapes=[pltpu.VMEM((k_pad, n * ncols_pad), mxu_dtype)],
    )(flat, w2d)

    # --- lane-dense (C_out, N*ncols_pad) -> (N, C_out, OH, OW) (glue) ------
    out = out2d.reshape(c_out, n, ncols_pad)[:, :, :ncols]
    out = out.reshape(c_out, n, oh, wq)[..., :ow]
    out = jnp.transpose(out, (1, 0, 2, 3))
    return out[0] if squeeze else out


def _reference(x, kernel, padding, stride):
    """XLA reference (cross-correlation, NCHW/OIHW) for validation."""
    return jax.lax.conv_general_dilated(
        x.astype(jnp.float32),
        kernel.astype(jnp.float32),
        window_strides=(stride, stride),
        padding=[(padding, padding), (padding, padding)],
        dimension_numbers=("NCHW", "OIHW", "NCHW"),
    )


if __name__ == "__main__":
    key = jax.random.PRNGKey(0)
    kx, kk = jax.random.split(key)

    # Batch of 2 images (N, C_in, H, W) and a (C_out, C_in, KH, KW) kernel.
    x = jax.random.normal(kx, (2, 4, 16, 16), dtype=jnp.float32)
    kernel = jax.random.normal(kk, (8, 4, 3, 3), dtype=jnp.float32)

    # bf16-rounded inputs for comparing the default bf16-operand MXU path.
    xb = x.astype(jnp.bfloat16).astype(jnp.float32)
    kb = kernel.astype(jnp.bfloat16).astype(jnp.float32)

    # Case 1: batch=2, padding=1, stride=1, default bf16 MXU / f32 accum.
    out1 = jax.block_until_ready(conv2d(x, kernel, padding=1, stride=1))
    ref1 = _reference(xb, kb, padding=1, stride=1)
    assert out1.shape == (2, 8, 16, 16), out1.shape
    assert jnp.allclose(out1, ref1, atol=1e-2, rtol=1e-2)

    # Case 2: padding=0, stride=2 (strided path fused in-kernel) -> (2,8,7,7)
    out2 = jax.block_until_ready(conv2d(x, kernel, padding=0, stride=2))
    ref2 = _reference(xb, kb, padding=0, stride=2)
    assert out2.shape == ref2.shape == (2, 8, 7, 7), (out2.shape, ref2.shape)
    assert jnp.allclose(out2, ref2, atol=1e-2, rtol=1e-2)

    # Case 3: exact f32 MXU path, tight tolerance against the f32 reference.
    out3 = jax.block_until_ready(
        conv2d(x, kernel, padding=1, stride=1, mxu_dtype=jnp.float32))
    ref3 = _reference(x, kernel, padding=1, stride=1)
    assert out3.shape == (2, 8, 16, 16), out3.shape
    assert jnp.allclose(out3, ref3, atol=1e-3, rtol=1e-3)

    # Case 4: single un-batched (C_in, H, W) image — the module's signature.
    out4 = jax.block_until_ready(conv2d(x[0], kernel, padding=1, stride=1))
    assert out4.shape == (8, 16, 16), out4.shape
    assert jnp.allclose(out4, ref1[0], atol=1e-2, rtol=1e-2)

    print("KERNEL_OK")
</pallas_src>

<mosaic_0001>
module attributes {stable_mosaic.version = 11 : i64} {
  func.func @_conv2d_mxu_kernel(%arg0: memref<2x1x16x512xbf16, #tpu.memory_space<vmem>>, %arg1: memref<8x144xbf16, #tpu.memory_space<vmem>>, %arg2: memref<8x768xf32, #tpu.memory_space<vmem>>, %arg3: memref<144x768xbf16, #tpu.memory_space<vmem>>) attributes {dimension_semantics = [], scalar_prefetch = 0 : i64, scratch_operands = 1 : i64, tpu.core_type = #tpu.core_type<tc>} {
    %c0 = arith.constant 0 : index
    %c0_0 = arith.constant 0 : index
    %c0_1 = arith.constant 0 : index
    %c0_2 = arith.constant 0 : index
    %0 = vector.load %arg0[%c0, %c0_0, %c0_1, %c0_2] : memref<2x1x16x512xbf16, #tpu.memory_space<vmem>>, vector<1x1x16x384xbf16>
    %1 = vector.shape_cast %0 : vector<1x1x16x384xbf16> to vector<16x384xbf16>
    %c0_3 = arith.constant 0 : index
    %c0_4 = arith.constant 0 : index
    %2 = vector.load %arg3[%c0_3, %c0_4] : memref<144x768xbf16, #tpu.memory_space<vmem>>, vector<16x384xbf16>
    tpu.vector_store %arg3[%c0_3, %c0_4], %1 {strides = array<i32>} : memref<144x768xbf16, #tpu.memory_space<vmem>>, vector<16x384xbf16>,
    %c0_5 = arith.constant 0 : index
    %c0_6 = arith.constant 0 : index
    %c0_7 = arith.constant 0 : index
    %c1 = arith.constant 1 : index
    %3 = vector.load %arg0[%c0_5, %c0_6, %c0_7, %c1] : memref<2x1x16x512xbf16, #tpu.memory_space<vmem>>, vector<1x1x16x384xbf16>
    %4 = vector.shape_cast %3 : vector<1x1x16x384xbf16> to vector<16x384xbf16>
    %c16 = arith.constant 16 : index
    %c0_8 = arith.constant 0 : index
    %5 = vector.load %arg3[%c16, %c0_8] : memref<144x768xbf16, #tpu.memory_space<vmem>>, vector<16x384xbf16>
    tpu.vector_store %arg3[%c16, %c0_8], %4 {strides = array<i32>} : memref<144x768xbf16, #tpu.memory_space<vmem>>, vector<16x384xbf16>,
    %c0_9 = arith.constant 0 : index
    %c0_10 = arith.constant 0 : index
    %c0_11 = arith.constant 0 : index
    %c2 = arith.constant 2 : index
    %6 = vector.load %arg0[%c0_9, %c0_10, %c0_11, %c2] : memref<2x1x16x512xbf16, #tpu.memory_space<vmem>>, vector<1x1x16x384xbf16>
    %7 = vector.shape_cast %6 : vector<1x1x16x384xbf16> to vector<16x384xbf16>
    %c32 = arith.constant 32 : index
    %c0_12 = arith.constant 0 : index
    %8 = vector.load %arg3[%c32, %c0_12] : memref<144x768xbf16, #tpu.memory_space<vmem>>, vector<16x384xbf16>
    tpu.vector_store %arg3[%c32, %c0_12], %7 {strides = array<i32>} : memref<144x768xbf16, #tpu.memory_space<vmem>>, vector<16x384xbf16>,
    %c0_13 = arith.constant 0 : index
    %c0_14 = arith.constant 0 : index
    %c0_15 = arith.constant 0 : index
    %c18 = arith.constant 18 : index
    %9 = vector.load %arg0[%c0_13, %c0_14, %c0_15, %c18] : memref<2x1x16x512xbf16, #tpu.memory_space<vmem>>, vector<1x1x16x384xbf16>
    %10 = vector.shape_cast %9 : vector<1x1x16x384xbf16> to vector<16x384xbf16>
    %c48 = arith.constant 48 : index
    %c0_16 = arith.constant 0 : index
    %11 = vector.load %arg3[%c48, %c0_16] : memref<144x768xbf16, #tpu.memory_space<vmem>>, vector<16x384xbf16>
    tpu.vector_store %arg3[%c48, %c0_16], %10 {strides = array<i32>} : memref<144x768xbf16, #tpu.memory_space<vmem>>, vector<16x384xbf16>,
    %c0_17 = arith.constant 0 : index
    %c0_18 = arith.constant 0 : index
    %c0_19 = arith.constant 0 : index
    %c19 = arith.constant 19 : index
    %12 = vector.load %arg0[%c0_17, %c0_18, %c0_19, %c19] : memref<2x1x16x512xbf16, #tpu.memory_space<vmem>>, vector<1x1x16x384xbf16>
    %13 = vector.shape_cast %12 : vector<1x1x16x384xbf16> to vector<16x384xbf16>
    %c64 = arith.constant 64 : index
    %c0_20 = arith.constant 0 : index
    %14 = vector.load %arg3[%c64, %c0_20] : memref<144x768xbf16, #tpu.memory_space<vmem>>, vector<16x384xbf16>
    tpu.vector_store %arg3[%c64, %c0_20], %13 {strides = array<i32>} : memref<144x768xbf16, #tpu.memory_space<vmem>>, vector<16x384xbf16>,
    %c0_21 = arith.constant 0 : index
    %c0_22 = arith.constant 0 : index
    %c0_23 = arith.constant 0 : index
    %c20 = arith.constant 20 : index
    %15 = vector.load %arg0[%c0_21, %c0_22, %c0_23, %c20] : memref<2x1x16x512xbf16, #tpu.memory_space<vmem>>, vector<1x1x16x384xbf16>
    %16 = vector.shape_cast %15 : vector<1x1x16x384xbf16> to vector<16x384xbf16>
    %c80 = arith.constant 80 : index
    %c0_24 = arith.constant 0 : index
    %17 = vector.load %arg3[%c80, %c0_24] : memref<144x768xbf16, #tpu.memory_space<vmem>>, vector<16x384xbf16>
    tpu.vector_store %arg3[%c80, %c0_24], %16 {strides = array<i32>} : memref<144x768xbf16, #tpu.memory_space<vmem>>, vector<16x384xbf16>,
    %c0_25 = arith.constant 0 : index
    %c0_26 = arith.constant 0 : index
    %c0_27 = arith.constant 0 : index
    %c36 = arith.constant 36 : index
    %18 = vector.load %arg0[%c0_25, %c0_26, %c0_27, %c36] : memref<2x1x16x512xbf16, #tpu.memory_space<vmem>>, vector<1x1x16x384xbf16>
    %19 = vector.shape_cast %18 : vector<1x1x16x384xbf16> to vector<16x384xbf16>
    %c96 = arith.constant 96 : index
    %c0_28 = arith.constant 0 : index
    %20 = vector.load %arg3[%c96, %c0_28] : memref<144x768xbf16, #tpu.memory_space<vmem>>, vector<16x384xbf16>
    tpu.vector_store %arg3[%c96, %c0_28], %19 {strides = array<i32>} : memref<144x768xbf16, #tpu.memory_space<vmem>>, vector<16x384xbf16>,
    %c0_29 = arith.constant 0 : index
    %c0_30 = arith.constant 0 : index
    %c0_31 = arith.constant 0 : index
    %c37 = arith.constant 37 : index
    %21 = vector.load %arg0[%c0_29, %c0_30, %c0_31, %c37] : memref<2x1x16x512xbf16, #tpu.memory_space<vmem>>, vector<1x1x16x384xbf16>
    %22 = vector.shape_cast %21 : vector<1x1x16x384xbf16> to vector<16x384xbf16>
    %c112 = arith.constant 112 : index
    %c0_32 = arith.constant 0 : index
    %23 = vector.load %arg3[%c112, %c0_32] : memref<144x768xbf16, #tpu.memory_space<vmem>>, vector<16x384xbf16>
    tpu.vector_store %arg3[%c112, %c0_32], %22 {strides = array<i32>} : memref<144x768xbf16, #tpu.memory_space<vmem>>, vector<16x384xbf16>,
    %c0_33 = arith.constant 0 : index
    %c0_34 = arith.constant 0 : index
    %c0_35 = arith.constant 0 : index
    %c38 = arith.constant 38 : index
    %24 = vector.load %arg0[%c0_33, %c0_34, %c0_35, %c38] : memref<2x1x16x512xbf16, #tpu.memory_space<vmem>>, vector<1x1x16x384xbf16>
    %25 = vector.shape_cast %24 : vector<1x1x16x384xbf16> to vector<16x384xbf16>
    %c128 = arith.constant 128 : index
    %c0_36 = arith.constant 0 : index
    %26 = vector.load %arg3[%c128, %c0_36] : memref<144x768xbf16, #tpu.memory_space<vmem>>, vector<16x384xbf16>
    tpu.vector_store %arg3[%c128, %c0_36], %25 {strides = array<i32>} : memref<144x768xbf16, #tpu.memory_space<vmem>>, vector<16x384xbf16>,
    %c1_37 = arith.constant 1 : index
    %c0_38 = arith.constant 0 : index
    %c0_39 = arith.constant 0 : index
    %c0_40 = arith.constant 0 : index
    %27 = vector.load %arg0[%c1_37, %c0_38, %c0_39, %c0_40] : memref<2x1x16x512xbf16, #tpu.memory_space<vmem>>, vector<1x1x16x384xbf16>
    %28 = vector.shape_cast %27 : vector<1x1x16x384xbf16> to vector<16x384xbf16>
    %c0_41 = arith.constant 0 : index
    %c384 = arith.constant 384 : index
    %29 = vector.load %arg3[%c0_41, %c384] : memref<144x768xbf16, #tpu.memory_space<vmem>>, vector<16x384xbf16>
    tpu.vector_store %arg3[%c0_41, %c384], %28 {strides = array<i32>} : memref<144x768xbf16, #tpu.memory_space<vmem>>, vector<16x384xbf16>,
    %c1_42 = arith.constant 1 : index
    %c0_43 = arith.constant 0 : index
    %c0_44 = arith.constant 0 : index
    %c1_45 = arith.constant 1 : index
    %30 = vector.load %arg0[%c1_42, %c0_43, %c0_44, %c1_45] : memref<2x1x16x512xbf16, #tpu.memory_space<vmem>>, vector<1x1x16x384xbf16>
    %31 = vector.shape_cast %30 : vector<1x1x16x384xbf16> to vector<16x384xbf16>
    %c16_46 = arith.constant 16 : index
    %c384_47 = arith.constant 384 : index
    %32 = vector.load %arg3[%c16_46, %c384_47] : memref<144x768xbf16, #tpu.memory_space<vmem>>, vector<16x384xbf16>
    tpu.vector_store %arg3[%c16_46, %c384_47], %31 {strides = array<i32>} : memref<144x768xbf16, #tpu.memory_space<vmem>>, vector<16x384xbf16>,
    %c1_48 = arith.constant 1 : index
    %c0_49 = arith.constant 0 : index
    %c0_50 = arith.constant 0 : index
    %c2_51 = arith.constant 2 : index
    %33 = vector.load %arg0[%c1_48, %c0_49, %c0_50, %c2_51] : memref<2x1x16x512xbf16, #tpu.memory_space<vmem>>, vector<1x1x16x384xbf16>
    %34 = vector.shape_cast %33 : vector<1x1x16x384xbf16> to vector<16x384xbf16>
    %c32_52 = arith.constant 32 : index
    %c384_53 = arith.constant 384 : index
    %35 = vector.load %arg3[%c32_52, %c384_53] : memref<144x768xbf16, #tpu.memory_space<vmem>>, vector<16x384xbf16>
    tpu.vector_store %arg3[%c32_52, %c384_53], %34 {strides = array<i32>} : memref<144x768xbf16, #tpu.memory_space<vmem>>, vector<16x384xbf16>,
    %c1_54 = arith.constant 1 : index
    %c0_55 = arith.constant 0 : index
    %c0_56 = arith.constant 0 : index
    %c18_57 = arith.constant 18 : index
    %36 = vector.load %arg0[%c1_54, %c0_55, %c0_56, %c18_57] : memref<2x1x16x512xbf16, #tpu.memory_space<vmem>>, vector<1x1x16x384xbf16>
    %37 = vector.shape_cast %36 : vector<1x1x16x384xbf16> to vector<16x384xbf16>
    %c48_58 = arith.constant 48 : index
    %c384_59 = arith.constant 384 : index
    %38 = vector.load %arg3[%c48_58, %c384_59] : memref<144x768xbf16, #tpu.memory_space<vmem>>, vector<16x384xbf16>
    tpu.vector_store %arg3[%c48_58, %c384_59], %37 {strides = array<i32>} : memref<144x768xbf16, #tpu.memory_space<vmem>>, vector<16x384xbf16>,
    %c1_60 = arith.constant 1 : index
    %c0_61 = arith.constant 0 : index
    %c0_62 = arith.constant 0 : index
    %c19_63 = arith.constant 19 : index
    %39 = vector.load %arg0[%c1_60, %c0_61, %c0_62, %c19_63] : memref<2x1x16x512xbf16, #tpu.memory_space<vmem>>, vector<1x1x16x384xbf16>
    %40 = vector.shape_cast %39 : vector<1x1x16x384xbf16> to vector<16x384xbf16>
    %c64_64 = arith.constant 64 : index
    %c384_65 = arith.constant 384 : index
    %41 = vector.load %arg3[%c64_64, %c384_65] : memref<144x768xbf16, #tpu.memory_space<vmem>>, vector<16x384xbf16>
    tpu.vector_store %arg3[%c64_64, %c384_65], %40 {strides = array<i32>} : memref<144x768xbf16, #tpu.memory_space<vmem>>, vector<16x384xbf16>,
    %c1_66 = arith.constant 1 : index
    %c0_67 = arith.constant 0 : index
    %c0_68 = arith.constant 0 : index
    %c20_69 = arith.constant 20 : index
    %42 = vector.load %arg0[%c1_66, %c0_67, %c0_68, %c20_69] : memref<2x1x16x512xbf16, #tpu.memory_space<vmem>>, vector<1x1x16x384xbf16>
    %43 = vector.shape_cast %42 : vector<1x1x16x384xbf16> to vector<16x384xbf16>
    %c80_70 = arith.constant 80 : index
    %c384_71 = arith.constant 384 : index
    %44 = vector.load %arg3[%c80_70, %c384_71] : memref<144x768xbf16, #tpu.memory_space<vmem>>, vector<16x384xbf16>
    tpu.vector_store %arg3[%c80_70, %c384_71], %43 {strides = array<i32>} : memref<144x768xbf16, #tpu.memory_space<vmem>>, vector<16x384xbf16>,
    %c1_72 = arith.constant 1 : index
    %c0_73 = arith.constant 0 : index
    %c0_74 = arith.constant 0 : index
    %c36_75 = arith.constant 36 : index
    %45 = vector.load %arg0[%c1_72, %c0_73, %c0_74, %c36_75] : memref<2x1x16x512xbf16, #tpu.memory_space<vmem>>, vector<1x1x16x384xbf16>
    %46 = vector.shape_cast %45 : vector<1x1x16x384xbf16> to vector<16x384xbf16>
    %c96_76 = arith.constant 96 : index
    %c384_77 = arith.constant 384 : index
    %47 = vector.load %arg3[%c96_76, %c384_77] : memref<144x768xbf16, #tpu.memory_space<vmem>>, vector<16x384xbf16>
    tpu.vector_store %arg3[%c96_76, %c384_77], %46 {strides = array<i32>} : memref<144x768xbf16, #tpu.memory_space<vmem>>, vector<16x384xbf16>,
    %c1_78 = arith.constant 1 : index
    %c0_79 = arith.constant 0 : index
    %c0_80 = arith.constant 0 : index
    %c37_81 = arith.constant 37 : index
    %48 = vector.load %arg0[%c1_78, %c0_79, %c0_80, %c37_81] : memref<2x1x16x512xbf16, #tpu.memory_space<vmem>>, vector<1x1x16x384xbf16>
    %49 = vector.shape_cast %48 : vector<1x1x16x384xbf16> to vector<16x384xbf16>
    %c112_82 = arith.constant 112 : index
    %c384_83 = arith.constant 384 : index
    %50 = vector.load %arg3[%c112_82, %c384_83] : memref<144x768xbf16, #tpu.memory_space<vmem>>, vector<16x384xbf16>
    tpu.vector_store %arg3[%c112_82, %c384_83], %49 {strides = array<i32>} : memref<144x768xbf16, #tpu.memory_space<vmem>>, vector<16x384xbf16>,
    %c1_84 = arith.constant 1 : index
    %c0_85 = arith.constant 0 : index
    %c0_86 = arith.constant 0 : index
    %c38_87 = arith.constant 38 : index
    %51 = vector.load %arg0[%c1_84, %c0_85, %c0_86, %c38_87] : memref<2x1x16x512xbf16, #tpu.memory_space<vmem>>, vector<1x1x16x384xbf16>
    %52 = vector.shape_cast %51 : vector<1x1x16x384xbf16> to vector<16x384xbf16>
    %c128_88 = arith.constant 128 : index
    %c384_89 = arith.constant 384 : index
    %53 = vector.load %arg3[%c128_88, %c384_89] : memref<144x768xbf16, #tpu.memory_space<vmem>>, vector<16x384xbf16>
    tpu.vector_store %arg3[%c128_88, %c384_89], %52 {strides = array<i32>} : memref<144x768xbf16, #tpu.memory_space<vmem>>, vector<16x384xbf16>,
    %c0_90 = arith.constant 0 : index
    %c0_91 = arith.constant 0 : index
    %54 = vector.load %arg1[%c0_90, %c0_91] : memref<8x144xbf16, #tpu.memory_space<vmem>>, vector<8x144xbf16>
    %c0_92 = arith.constant 0 : index
    %c0_93 = arith.constant 0 : index
    %55 = vector.load %arg3[%c0_92, %c0_93] : memref<144x768xbf16, #tpu.memory_space<vmem>>, vector<144x768xbf16>
    %cst = arith.constant dense<0.000000e+00> : vector<8x768xf32>
    %56 = tpu.matmul %54, %55, %cst {dimension_numbers = #tpu.dot_dimension_numbers<[1], [0], [0], [1], [0, 0, 1, 1], [], []>} : vector<8x144xbf16>, vector<144x768xbf16>, vector<8x768xf32> -> vector<8x768xf32>
    %c0_94 = arith.constant 0 : index
    %c0_95 = arith.constant 0 : index
    %57 = vector.load %arg2[%c0_94, %c0_95] : memref<8x768xf32, #tpu.memory_space<vmem>>, vector<8x768xf32>
    tpu.vector_store %arg2[%c0_94, %c0_95], %56 {strides = array<i32>} : memref<8x768xf32, #tpu.memory_space<vmem>>, vector<8x768xf32>,
    return
  }
}

</mosaic_0001>

<bundles_post_ra>
// kernel: tpu_custom_call.1
= control target key start
LH: loop header
LB: loop body
LE: loop exit
PB: predicated region body
PF: predicated region fallthrough
CT: control target
= control target key end

     0   :  { %7 = vsyncpa [#allocation4], 0  ;;  %s1321_s0 = inlined_call_operand.hbm [shape: bf16[2,1,16,512], index: 0, kind: input, shape index: {}]   ;;  %s1322_s1 = inlined_call_operand.hbm [shape: bf16[8,144], index: 1, kind: input, shape index: {}]   ;;  %s1323_s2 = inlined_call_operand.hbm [shape: f32[8,768], index: 2, kind: output, shape index: {}]  }
   0x1   :  { %8 = vsyncpa [#allocation7], 0 }
   0x2   :  { %9 = vsyncpa [#allocation5], 0  ;;  %s1072_s9 = smov [#allocation3]   ;;  %s1000_s13 = scalar_lea.hbm %s1321_s0, 1024 }
   0x3   :  { %s15_s10 = sshll.u32 %s1072_s9, 4  ;;  %p1001_p0 = scmp.ne.s32.totalorder %s1321_s0, %s1000_s13  ;;  %s16_s10 = int_to_ptr.vmem [resolvable:$true] %s15_s10 }
   0x4   :  { %p1004_p1 = scmp.lt.u32.totalorder %s1000_s13, %s1321_s0 }
   0x6   :  { %p1006_p2 = pnand %p1004_p1, %p1001_p0 }
   0x8   :  { %1009 = shalt.err (!%p1006_p2)
}
   0x9   :  { %s1010_s18 = scalar_lea.vmem %s16_s10, 1024  ;;  %p1015_p4 = scmp.lt.s32.totalorder %s16_s10, %s16_s10 }
   0xa   :  { %p1011_p3 = scmp.ne.s32.totalorder %s16_s10, %s1010_s18  ;;  %p1016_p5 = scmp.lt.s32.totalorder %s1010_s18, %s1010_s18 }
   0xc   :  { %p1017_p6 = por %p1016_p5, %p1015_p4 }
   0xe   :  { %p1018_p7 = pnand %p1017_p6, %p1011_p3 }
  0x10   :  { %1021 = shalt.err (!%p1018_p7)
}
  0x11   :  { %s1073_s19 = smov 256   ;;  %s1074_s20 = smov 16  }
  0x12   :  { %21 = dma.hbm_to_vmem [thread:$0]  %s1321_s0, 1024, %s16_s10, [#allocation4], %s1073_s19, %s1073_s19, %s1074_s20  }
  0x13   :  { %s1075_s23 = smov [#allocation6]   ;;  %s1022_s27 = scalar_lea.hbm %s1322_s1, 128 }
  0x14   :  { %s28_s24 = sshll.u32 %s1075_s23, 4  ;;  %p1023_p8 = scmp.ne.s32.totalorder %s1322_s1, %s1022_s27  ;;  %s29_s24 = int_to_ptr.vmem [resolvable:$true] %s28_s24 }
  0x15   :  { %p1026_p9 = scmp.lt.u32.totalorder %s1022_s27, %s1322_s1 }
  0x17   :  { %p1028_p10 = pnand %p1026_p9, %p1023_p8 }
  0x19   :  { %1031 = shalt.err (!%p1028_p10)
}
  0x1a   :  { %s1032_s4 = scalar_lea.vmem %s29_s24, 128  ;;  %p1037_p12 = scmp.lt.s32.totalorder %s29_s24, %s29_s24 }
  0x1b   :  { %p1033_p11 = scmp.ne.s32.totalorder %s29_s24, %s1032_s4  ;;  %p1038_p13 = scmp.lt.s32.totalorder %s1032_s4, %s1032_s4 }
  0x1d   :  { %p1039_p0 = por %p1038_p13, %p1037_p12 }
  0x1f   :  { %p1040_p1 = pnand %p1039_p0, %p1033_p11 }
  0x21   :  { %1043 = shalt.err (!%p1040_p1)
}
  0x22   :  { %31 = dma.hbm_to_vmem [thread:$0]  %s1322_s1, 128, %s29_s24, [#allocation7]  }
  0x23   :  { %1066 = dma.done.wait [#allocation4], 1024  }
  0x24   :  { %1067 = vsyncadd [#allocation4], 4294966272 }
  0x25   :  { %1068 = dma.done.wait [#allocation7], 128  }
  0x26   :  { %1069 = vsyncadd [#allocation7], 4294967168  ;;  %v984_v0 = vld [vmem:[#allocation3 + $0x4] ss:$16 sps:$4 sm:$0xff]   ;;  %v986_v1 = vld [vmem:[#allocation3] ss:$16 sps:$4 sm:$0xff]  }
  0x27   :  { %s1076_s6 = smov 127   ;;  %v987_v2 = vld [vmem:[#allocation3 + $0x8] ss:$16 sps:$4 sm:$0xff]   ;;  %751 = vmatprep.subr.bf16.mxu0 %v984_v0  ;;  %v1126_v3 = vld [vmem:[#allocation3 + $0x20] ss:$16 sps:$4 sm:$0xff]   ;;  %s1077_s1 = smov 126  }
  0x28   :  { %84 = vrot.lane.b32.xlu0 %v984_v0, %s1076_s6  ;;  %82 = vrot.lane.b32.xlu1 %v986_v1, %s1076_s6  ;;  %s1078_s7 = smov 110   ;;  %s1079_s8 = smov 109   ;;  %v996_v4 = vld [vmem:[#allocation3 + $0x8] ss:$16 sps:$4 sm:$0xff]   ;;  %v1145_v5 = vld [vmem:[#allocation6] sm:$0xff]  ;;  %vm747_vm0 = vcmask 130048  }
  0x29   :  { %752 = vmatpush1.bf16.msra.mxu0 %v986_v1  ;;  %792 = vmatprep.subr.bf16.mxu1 %v1126_v3  ;;  %s1080_s9 = smov 108   ;;  %s1081_s10 = smov 92   ;;  %v1149_v6 = vcombine.high %v1145_v5, %v1145_v5  ;;  %v1161_v7 = vld [vmem:[#allocation3 + $0x24] ss:$16 sps:$4 sm:$0xff]   ;;  %v992_v8 = vld [vmem:[#allocation3 + $0x28] ss:$16 sps:$4 sm:$0xff]   ;;  %v1261_v52 = vcombine.low %v1145_v5, %v1145_v5 }
  0x2a   :  { %s1082_s11 = smov 91   ;;  %793 = vmatpush1.bf16.msra.mxu1 %v996_v4  ;;  %s1083_s12 = smov 90   ;;  %v994_v9 = vld [vmem:[#allocation3 + $0x2c] ss:$16 sps:$4 sm:$0xff]   ;;  %vm90_vm1 = vcmask 1039360   ;;  %vm128_vm2 = vcmask 1031168  }
  0x2b   :  { %968 = vmatprep.mubr.msk.bf16.mxu0 %vm747_vm0, %v1149_v6  ;;  %969 = vmatprep.mubr.msk.bf16.mxu1 %vm747_vm0, %v1149_v6  ;;  %v995_v10 = vld [vmem:[#allocation3 + $0xc] ss:$16 sps:$4 sm:$0xff]   ;;  %vm166_vm3 = vcmask 900096   ;;  %vm204_vm4 = vcmask 891904   ;;  %vm242_vm5 = vcmask 883712   ;;  %vm280_vm6 = vcmask 752640  }
  0x2c   :  { %86 = vrot.lane.b32.xlu0 %v987_v2, %s1076_s6  ;;  %122 = vrot.lane.b32.xlu1 %v984_v0, %s1077_s1  ;;  %vm318_vm7 = vcmask 744448   ;;  %vm356_vm8 = vcmask 736256   ;;  %v998_v48 = vld [vmem:[#allocation3 + $0x28] ss:$16 sps:$4 sm:$0xff]   ;;  %s1084_s13 = smov [#allocation8]  }
  0x2d   :  { %s886_s14 = sshll.u32 %s1084_s13, 4  ;;  %s887_s14 = int_to_ptr.vmem [resolvable:$true] %s886_s14 }
  0x2e   :  { %s1044_s15 = scalar_lea.vmem %s887_s14, 768  ;;  %p1049_p3 = scmp.lt.s32.totalorder %s887_s14, %s887_s14 }
  0x2f   :  { %p1045_p2 = scmp.ne.s32.totalorder %s887_s14, %s1044_s15  ;;  %p1050_p4 = scmp.lt.s32.totalorder %s1044_s15, %s1044_s15 }
  0x30   :  { %124 = vrot.lane.b32.xlu0 %v987_v2, %s1077_s1  ;;  %120 = vrot.lane.b32.xlu1 %v986_v1, %s1077_s1 }
  0x31   :  { %p1051_p5 = por %p1050_p4, %p1049_p3 }
  0x33   :  { %p1052_p6 = pnand %p1051_p5, %p1045_p2 }
  0x34   :  { %160 = vrot.lane.b32.xlu0 %v984_v0, %s1078_s7  ;;  %162 = vrot.lane.b32.xlu1 %v987_v2, %s1078_s7 }
  0x38   :  { %158 = vrot.lane.b32.xlu0 %v986_v1, %s1078_s7  ;;  %198 = vrot.lane.b32.xlu1 %v984_v0, %s1079_s8 }
  0x3c   :  { %200 = vrot.lane.b32.xlu0 %v987_v2, %s1079_s8  ;;  %196 = vrot.lane.b32.xlu1 %v986_v1, %s1079_s8 }
  0x40   :  { %236 = vrot.lane.b32.xlu0 %v984_v0, %s1080_s9  ;;  %238 = vrot.lane.b32.xlu1 %v987_v2, %s1080_s9 }
  0x44   :  { %234 = vrot.lane.b32.xlu0 %v986_v1, %s1080_s9  ;;  %274 = vrot.lane.b32.xlu1 %v984_v0, %s1081_s10 }
  0x48   :  { %276 = vrot.lane.b32.xlu0 %v987_v2, %s1081_s10  ;;  %272 = vrot.lane.b32.xlu1 %v986_v1, %s1081_s10 }
  0x4c   :  { %312 = vrot.lane.b32.xlu0 %v984_v0, %s1082_s11  ;;  %314 = vrot.lane.b32.xlu1 %v987_v2, %s1082_s11 }
  0x50   :  { %310 = vrot.lane.b32.xlu0 %v986_v1, %s1082_s11  ;;  %350 = vrot.lane.b32.xlu1 %v984_v0, %s1083_s12 }
  0x54   :  { %352 = vrot.lane.b32.xlu0 %v987_v2, %s1083_s12  ;;  %348 = vrot.lane.b32.xlu1 %v986_v1, %s1083_s12 }
  0x58   :  { %410 = vrot.lane.b32.xlu0 %v1126_v3, %s1076_s6  ;;  %412 = vrot.lane.b32.xlu1 %v1161_v7, %s1076_s6 }
  0x5c   :  { %414 = vrot.lane.b32.xlu0 %v992_v8, %s1076_s6  ;;  %416 = vrot.lane.b32.xlu1 %v994_v9, %s1076_s6 }
  0x60   :  { %88 = vrot.lane.b32.xlu0 %v995_v10, %s1076_s6  ;;  %447 = vrot.lane.b32.xlu1 %v1126_v3, %s1077_s1 }
  0x64   :  { %449 = vrot.lane.b32.xlu0 %v1161_v7, %s1077_s1  ;;  %451 = vrot.lane.b32.xlu1 %v992_v8, %s1077_s1 }
  0x68   :  { %453 = vrot.lane.b32.xlu0 %v994_v9, %s1077_s1  ;;  %126 = vrot.lane.b32.xlu1 %v995_v10, %s1077_s1 }
  0x6c   :  { %484 = vrot.lane.b32.xlu0 %v1126_v3, %s1078_s7  ;;  %486 = vrot.lane.b32.xlu1 %v1161_v7, %s1078_s7 }
  0x70   :  { %488 = vrot.lane.b32.xlu0 %v992_v8, %s1078_s7  ;;  %490 = vrot.lane.b32.xlu1 %v994_v9, %s1078_s7 }
  0x74   :  { %164 = vrot.lane.b32.xlu0 %v995_v10, %s1078_s7  ;;  %521 = vrot.lane.b32.xlu1 %v1126_v3, %s1079_s8 }
  0x78   :  { %523 = vrot.lane.b32.xlu0 %v1161_v7, %s1079_s8  ;;  %525 = vrot.lane.b32.xlu1 %v992_v8, %s1079_s8 }
  0x7c   :  { %527 = vrot.lane.b32.xlu0 %v994_v9, %s1079_s8  ;;  %202 = vrot.lane.b32.xlu1 %v995_v10, %s1079_s8 }
  0x80   :  { %558 = vrot.lane.b32.xlu0 %v1126_v3, %s1080_s9  ;;  %560 = vrot.lane.b32.xlu1 %v1161_v7, %s1080_s9 }
  0x84   :  { %562 = vrot.lane.b32.xlu0 %v992_v8, %s1080_s9  ;;  %564 = vrot.lane.b32.xlu1 %v994_v9, %s1080_s9 }
  0x88   :  { %240 = vrot.lane.b32.xlu0 %v995_v10, %s1080_s9  ;;  %595 = vrot.lane.b32.xlu1 %v1126_v3, %s1081_s10 }
  0x8c   :  { %597 = vrot.lane.b32.xlu0 %v1161_v7, %s1081_s10  ;;  %599 = vrot.lane.b32.xlu1 %v992_v8, %s1081_s10 }
  0x90   :  { %601 = vrot.lane.b32.xlu0 %v994_v9, %s1081_s10  ;;  %278 = vrot.lane.b32.xlu1 %v995_v10, %s1081_s10 }
  0x94   :  { %632 = vrot.lane.b32.xlu0 %v1126_v3, %s1082_s11  ;;  %634 = vrot.lane.b32.xlu1 %v1161_v7, %s1082_s11 }
  0x98   :  { %636 = vrot.lane.b32.xlu0 %v992_v8, %s1082_s11  ;;  %638 = vrot.lane.b32.xlu1 %v994_v9, %s1082_s11 }
  0x9a   :  { %v85_v11 = vpop.permute.xlu0 %84  ;;  %v83_v12 = vpop.permute.xlu1 %82 }
  0x9b   :  { %v91_v16 = vsel %vm90_vm1, %v83_v12, %v85_v11 }
  0x9c   :  { %316 = vrot.lane.b32.xlu0 %v995_v10, %s1082_s11  ;;  %669 = vrot.lane.b32.xlu1 %v1126_v3, %s1083_s12 }
  0x9e   :  { %v1214_v13 = vpop.permute.xlu0 %86  ;;  %v123_v14 = vpop.permute.xlu1 %122 }
  0x9f   :  { %v92_v15 = vsel %vm90_vm1, %v85_v11, %v1214_v13 }
  0xa0   :  { %671 = vrot.lane.b32.xlu0 %v1161_v7, %s1083_s12  ;;  %753 = vmatprep.subr.bf16.mxu0 %v92_v15 }
  0xa1   :  { %673 = vrot.lane.b32.xlu1 %v992_v8, %s1083_s12  ;;  %754 = vmatpush1.bf16.msra.mxu0 %v91_v16 }
  0xa2   :  { %v1222_v17 = vpop.permute.xlu0 %124  ;;  %v121_v18 = vpop.permute.xlu1 %120 }
  0xa3   :  { %v130_v19 = vsel %vm128_vm2, %v123_v14, %v1222_v17  ;;  %v129_v20 = vsel %vm128_vm2, %v121_v18, %v123_v14 }
  0xa4   :  { %675 = vrot.lane.b32.xlu0 %v994_v9, %s1083_s12  ;;  %755 = vmatprep.subr.bf16.mxu0 %v130_v19 }
  0xa5   :  { %354 = vrot.lane.b32.xlu1 %v995_v10, %s1083_s12  ;;  %756 = vmatpush1.bf16.msra.mxu0 %v129_v20 }
  0xa6   :  { %v161_v21 = vpop.permute.xlu0 %160  ;;  %v1229_v22 = vpop.permute.xlu1 %162 }
  0xa7   :  { %v168_v23 = vsel %vm166_vm3, %v161_v21, %v1229_v22 }
  0xa8   :  { %757 = vmatprep.subr.bf16.mxu0 %v168_v23 }
  0xaa   :  { %v159_v24 = vpop.permute.xlu0 %158  ;;  %v199_v25 = vpop.permute.xlu1 %198 }
  0xab   :  { %v167_v26 = vsel %vm166_vm3, %v159_v24, %v161_v21 }
  0xac   :  { %758 = vmatpush1.bf16.msra.mxu0 %v167_v26 }
  0xae   :  { %v1234_v27 = vpop.permute.xlu0 %200  ;;  %v197_v28 = vpop.permute.xlu1 %196 }
  0xaf   :  { %v206_v29 = vsel %vm204_vm4, %v199_v25, %v1234_v27  ;;  %v205_v30 = vsel %vm204_vm4, %v197_v28, %v199_v25 }
  0xb0   :  { %759 = vmatprep.subr.bf16.mxu0 %v206_v29 }
  0xb1   :  { %760 = vmatpush1.bf16.msra.mxu0 %v205_v30 }
  0xb2   :  { %v237_v31 = vpop.permute.xlu0 %236  ;;  %v1239_v32 = vpop.permute.xlu1 %238 }
  0xb3   :  { %v244_v33 = vsel %vm242_vm5, %v237_v31, %v1239_v32 }
  0xb4   :  { %761 = vmatprep.subr.bf16.mxu0 %v244_v33 }
  0xb6   :  { %v235_v34 = vpop.permute.xlu0 %234  ;;  %v275_v35 = vpop.permute.xlu1 %274 }
  0xb7   :  { %v243_v36 = vsel %vm242_vm5, %v235_v34, %v237_v31 }
  0xb8   :  { %762 = vmatpush1.bf16.msra.mxu0 %v243_v36 }
  0xba   :  { %v1244_v37 = vpop.permute.xlu0 %276  ;;  %v273_v38 = vpop.permute.xlu1 %272 }
  0xbb   :  { %v282_v39 = vsel %vm280_vm6, %v275_v35, %v1244_v37  ;;  %v281_v40 = vsel %vm280_vm6, %v273_v38, %v275_v35 }
  0xbc   :  { %763 = vmatprep.subr.bf16.mxu0 %v282_v39 }
  0xbd   :  { %764 = vmatpush1.bf16.msra.mxu0 %v281_v40 }
  0xbe   :  { %v313_v41 = vpop.permute.xlu0 %312  ;;  %v1249_v42 = vpop.permute.xlu1 %314 }
  0xbf   :  { %v320_v43 = vsel %vm318_vm7, %v313_v41, %v1249_v42 }
  0xc0   :  { %765 = vmatprep.subr.bf16.mxu0 %v320_v43 }
  0xc2   :  { %v311_v44 = vpop.permute.xlu0 %310  ;;  %v351_v45 = vpop.permute.xlu1 %350 }
  0xc3   :  { %v319_v46 = vsel %vm318_vm7, %v311_v44, %v313_v41 }
  0xc4   :  { %766 = vmatpush1.bf16.msra.mxu0 %v319_v46 }
  0xc6   :  { %v1254_v47 = vpop.permute.xlu0 %352  ;;  %v349_v49 = vpop.permute.xlu1 %348 }
  0xc7   :  { %v358_v50 = vsel %vm356_vm8, %v351_v45, %v1254_v47  ;;  %v357_v51 = vsel %vm356_vm8, %v349_v49, %v351_v45 }
  0xc8   :  { %767 = vmatprep.subr.bf16.mxu0 %v358_v50 }
  0xc9   :  { %768 = vmatpush1.bf16.msra.mxu0 %v357_v51 }
  0xca   :  { %v411_v53 = vpop.permute.xlu0 %410  ;;  %833 = vmatprep.subr.bf16.mxu0 %v998_v48  ;;  %v413_v54 = vpop.permute.xlu1 %412 }
  0xcb   :  { %v418_v55 = vsel %vm90_vm1, %v411_v53, %v413_v54 }
  0xcc   :  { %784 = vmatmul.mubr.bf16.vlgmr.msra.gmra.mrb[0].mxu0 %v1261_v52  ;;  %794 = vmatprep.subr.bf16.mxu1 %v418_v55 }
  0xcd   :  { %834 = vmatpush1.bf16.msra.mxu0 %v1161_v7  ;;  %970 = vmatprep.mubr.msk.bf16.mxu0 %vm747_vm0, %v1149_v6 }
  0xce   :  { %v415_v56 = vpop.permute.xlu0 %414  ;;  %v417_v58 = vpop.permute.xlu1 %416 }
  0xcf   :  { %v419_v57 = vsel %vm90_vm1, %v413_v54, %v415_v56  ;;  %v420_v59 = vsel %vm90_vm1, %v415_v56, %v417_v58 }
  0xd0   :  { %835 = vmatprep.subr.bf16.mxu0 %v420_v59 }
  0xd1   :  { %836 = vmatpush1.bf16.msra.mxu0 %v419_v57 }
  0xd2   :  { %v89_v60 = vpop.permute.xlu0 %88  ;;  %v448_v61 = vpop.permute.xlu1 %447 }
  0xd3   :  { %v93_v62 = vsel %vm90_vm1, %v1214_v13, %v89_v60 }
  0xd4   :  { %795 = vmatpush1.bf16.msra.mxu1 %v93_v62 }
  0xd6   :  { %v450_v63 = vpop.permute.xlu0 %449  ;;  %v452_v0 = vpop.permute.xlu1 %451 }
  0xd7   :  { %v455_v1 = vsel %vm128_vm2, %v448_v61, %v450_v63  ;;  %v456_v5 = vsel %vm128_vm2, %v450_v63, %v452_v0 }
  0xd8   :  { %796 = vmatprep.subr.bf16.mxu1 %v455_v1 }
  0xda   :  { %v454_v2 = vpop.permute.xlu0 %453  ;;  %v127_v3 = vpop.permute.xlu1 %126 }
  0xdb   :  { %v457_v4 = vsel %vm128_vm2, %v452_v0, %v454_v2  ;;  %v131_v6 = vsel %vm128_vm2, %v1222_v17, %v127_v3 }
  0xdc   :  { %837 = vmatprep.subr.bf16.mxu0 %v457_v4  ;;  %797 = vmatpush1.bf16.msra.mxu1 %v131_v6 }
  0xdd   :  { %838 = vmatpush1.bf16.msra.mxu0 %v456_v5 }
  0xde   :  { %v485_v7 = vpop.permute.xlu0 %484  ;;  %v487_v8 = vpop.permute.xlu1 %486 }
  0xdf   :  { %v492_v9 = vsel %vm166_vm3, %v485_v7, %v487_v8 }
  0xe0   :  { %798 = vmatprep.subr.bf16.mxu1 %v492_v9 }
  0xe2   :  { %v489_v10 = vpop.permute.xlu0 %488  ;;  %v491_v12 = vpop.permute.xlu1 %490 }
  0xe3   :  { %v493_v11 = vsel %vm166_vm3, %v487_v8, %v489_v10  ;;  %v494_v13 = vsel %vm166_vm3, %v489_v10, %v491_v12 }
  0xe4   :  { %839 = vmatprep.subr.bf16.mxu0 %v494_v13 }
  0xe5   :  { %840 = vmatpush1.bf16.msra.mxu0 %v493_v11 }
  0xe6   :  { %v165_v14 = vpop.permute.xlu0 %164  ;;  %v522_v15 = vpop.permute.xlu1 %521 }
  0xe7   :  { %v169_v16 = vsel %vm166_vm3, %v1229_v22, %v165_v14 }
  0xe8   :  { %799 = vmatpush1.bf16.msra.mxu1 %v169_v16 }
  0xea   :  { %v524_v17 = vpop.permute.xlu0 %523  ;;  %v526_v18 = vpop.permute.xlu1 %525 }
  0xeb   :  { %v529_v19 = vsel %vm204_vm4, %v522_v15, %v524_v17  ;;  %v530_v24 = vsel %vm204_vm4, %v524_v17, %v526_v18 }
  0xec   :  { %800 = vmatprep.subr.bf16.mxu1 %v529_v19 }
  0xee   :  { %v528_v20 = vpop.permute.xlu0 %527  ;;  %v203_v21 = vpop.permute.xlu1 %202 }
  0xef   :  { %v531_v23 = vsel %vm204_vm4, %v526_v18, %v528_v20  ;;  %v207_v25 = vsel %vm204_vm4, %v1234_v27, %v203_v21 }
  0xf0   :  { %841 = vmatprep.subr.bf16.mxu0 %v531_v23  ;;  %801 = vmatpush1.bf16.msra.mxu1 %v207_v25 }
  0xf1   :  { %842 = vmatpush1.bf16.msra.mxu0 %v530_v24 }
  0xf2   :  { %v559_v26 = vpop.permute.xlu0 %558  ;;  %v561_v22 = vpop.permute.xlu1 %560 }
  0xf3   :  { %v566_v28 = vsel %vm242_vm5, %v559_v26, %v561_v22 }
  0xf4   :  { %802 = vmatprep.subr.bf16.mxu1 %v566_v28 }
  0xf6   :  { %v563_v29 = vpop.permute.xlu0 %562  ;;  %v565_v31 = vpop.permute.xlu1 %564 }
  0xf7   :  { %v567_v30 = vsel %vm242_vm5, %v561_v22, %v563_v29  ;;  %v568_v33 = vsel %vm242_vm5, %v563_v29, %v565_v31 }
  0xf8   :  { %843 = vmatprep.subr.bf16.mxu0 %v568_v33 }
  0xf9   :  { %844 = vmatpush1.bf16.msra.mxu0 %v567_v30 }
  0xfa   :  { %v241_v34 = vpop.permute.xlu0 %240  ;;  %v596_v35 = vpop.permute.xlu1 %595 }
  0xfb   :  { %v245_v27 = vsel %vm242_vm5, %v1239_v32, %v241_v34 }
  0xfc   :  { %803 = vmatpush1.bf16.msra.mxu1 %v245_v27 }
  0xfe   :  { %v598_v36 = vpop.permute.xlu0 %597  ;;  %v600_v38 = vpop.permute.xlu1 %599 }
  0xff   :  { %v603_v39 = vsel %vm280_vm6, %v596_v35, %v598_v36  ;;  %v604_v44 = vsel %vm280_vm6, %v598_v36, %v600_v38 }
 0x100   :  { %804 = vmatprep.subr.bf16.mxu1 %v603_v39 }
 0x102   :  { %v602_v40 = vpop.permute.xlu0 %601  ;;  %v279_v41 = vpop.permute.xlu1 %278 }
 0x103   :  { %v605_v43 = vsel %vm280_vm6, %v600_v38, %v602_v40  ;;  %v283_v45 = vsel %vm280_vm6, %v1244_v37, %v279_v41 }
 0x104   :  { %845 = vmatprep.subr.bf16.mxu0 %v605_v43  ;;  %805 = vmatpush1.bf16.msra.mxu1 %v283_v45 }
 0x105   :  { %846 = vmatpush1.bf16.msra.mxu0 %v604_v44 }
 0x106   :  { %v633_v46 = vpop.permute.xlu0 %632  ;;  %v635_v32 = vpop.permute.xlu1 %634 }
 0x107   :  { %v640_v48 = vsel %vm318_vm7, %v633_v46, %v635_v32 }
 0x108   :  { %806 = vmatprep.subr.bf16.mxu1 %v640_v48 }
 0x10a   :  { %v637_v49 = vpop.permute.xlu0 %636  ;;  %v639_v51 = vpop.permute.xlu1 %638 }
 0x10b   :  { %v641_v50 = vsel %vm318_vm7, %v635_v32, %v637_v49  ;;  %v642_v53 = vsel %vm318_vm7, %v637_v49, %v639_v51 }
 0x10c   :  { %847 = vmatprep.subr.bf16.mxu0 %v642_v53 }
 0x10d   :  { %848 = vmatpush1.bf16.msra.mxu0 %v641_v50 }
 0x10e   :  { %v317_v54 = vpop.permute.xlu0 %316  ;;  %v670_v55 = vpop.permute.xlu1 %669 }
 0x10f   :  { %v321_v37 = vsel %vm318_vm7, %v1249_v42, %v317_v54 }
 0x110   :  { %807 = vmatpush1.bf16.msra.mxu1 %v321_v37 }
 0x112   :  { %v672_v56 = vpop.permute.xlu0 %671 }
 0x113   :  { %v674_v57 = vpop.permute.xlu1 %673  ;;  %v677_v58 = vsel %vm356_vm8, %v670_v55, %v672_v56 }
 0x114   :  { %808 = vmatprep.subr.bf16.mxu1 %v677_v58  ;;  %v678_v62 = vsel %vm356_vm8, %v672_v56, %v674_v57 }
 0x116   :  { %v676_v59 = vpop.permute.xlu0 %675 }
 0x117   :  { %v355_v60 = vpop.permute.xlu1 %354  ;;  %v679_v61 = vsel %vm356_vm8, %v674_v57, %v676_v59 }
 0x118   :  { %v359_v63 = vsel %vm356_vm8, %v1254_v47, %v355_v60  ;;  %849 = vmatprep.subr.bf16.mxu0 %v679_v61 }
 0x119   :  { %809 = vmatpush1.bf16.msra.mxu1 %v359_v63  ;;  %850 = vmatpush1.bf16.msra.mxu0 %v678_v62 }
 0x11c   :  { %825 = vmatmul.mubr.bf16.vlgmr.msra.gmra.mrb[0].mxu1 %v1261_v52  ;;  %866 = vmatmul.mubr.bf16.vlgmr.msra.gmra.mrb[4].mxu0 %v1261_v52 }
 0x19f   :  { %v785_v42 = vpop.f32.mrb[0].mxu0 }
 0x1a0   :  { %874 = vst [vmem:[#allocation8] sm:$0xff] %v785_v42  ;;  %v787_v0 = vpop.f32.mrb[1].mxu0 }
 0x1a1   :  { %875 = vst [vmem:[#allocation8 + $0x8] sm:$0xff] %v787_v0  ;;  %v789_v1 = vpop.f32.mrb[2].mxu0 }
 0x1a2   :  { %v790_v2 = vpop.f32.mrb[3].mxu0 }
 0x1ef   :  { %v826_v3 = vpop.f32.mrb[0].mxu1  ;;  %v867_v4 = vpop.f32.mrb[4].mxu0 }
 0x1f0   :  { %876 = vst [vmem:[#allocation8 + $0x10] sm:$0xff] %v826_v3  ;;  %v828_v47 = vpop.f32.mrb[1].mxu1  ;;  %878 = vst [vmem:[#allocation8 + $0x20] sm:$0xff] %v867_v4  ;;  %v869_v5 = vpop.f32.mrb[5].mxu0 }
 0x1f1   :  { %877 = vst [vmem:[#allocation8 + $0x18] sm:$0xff] %v828_v47  ;;  %v830_v6 = vpop.f32.mrb[2].mxu1  ;;  %879 = vst [vmem:[#allocation8 + $0x28] sm:$0xff] %v869_v5  ;;  %v871_v7 = vpop.f32.mrb[6].mxu0 }
 0x1f2   :  { %v831_v52 = vpop.f32.mrb[3].mxu1  ;;  %v872_v8 = vpop.f32.mrb[7].mxu0 }
 0x1f3   :  { %1055 = shalt.err (!%p1052_p6)
}
 0x1f4   :  { %s1056_s18 = scalar_lea.hbm %s1323_s2, 768 }
 0x1f5   :  { %p1057_p7 = scmp.ne.s32.totalorder %s1323_s2, %s1056_s18  ;;  %p1060_p8 = scmp.lt.u32.totalorder %s1056_s18, %s1323_s2 }
 0x1f7   :  { %p1062_p9 = pnand %p1060_p8, %p1057_p7 }
 0x1f9   :  { %1065 = shalt.err (!%p1062_p9)
}
 0x1fa   :  { %889 = dma.vmem_to_hbm [thread:$0]  %s887_s14, 768, %s1323_s2, [#allocation5]  }
 0x1fb   :  { %1070 = dma.done.wait [#allocation5], 768  }
 0x1fc   :  { %1071 = vsyncadd [#allocation5], 4294966528 }
 0x1fd   :  { %893 = vsyncpa [#allocation4], 1 }
 0x1fe   :  { %894 = vsyncpa [#allocation7], 1 }
 0x1ff   :  { %895 = vsyncpa [#allocation5], 1 }

</bundles_post_ra>
